<compile_context>
chip_gen: v5e
topology: v5e:2x2
jax: 0.10.0
libtpu: 0.0.40
codegen_flags: <defaults>
</compile_context>

<pallas_src>
import functools

import jax
import jax.numpy as jnp
from jax.experimental import pallas as pl
from jax.experimental.pallas import tpu as pltpu


def _smooth_kernel(x_ref, lmask_ref, rmask_ref, o_ref, *, H, W, C):
    """Zero-padded 3x3 mean over (h, w) for a (T, H, W*C) block of slabs.

    Lane index within a row is w*C + c, so a +-1 shift in w is a lane rotation
    by +-C; the wrapped-in border lanes are zeroed by multiplying with the
    precomputed masks.  A +-1 shift in h is a zero-padded shifted slice along
    the (sublane) h axis of the 3-D tile.
    """
    WC = W * C
    x = x_ref[...].astype(jnp.float32)                       # (T, H, WC)

    # Separable pass 1: 3-tap zero-padded sum along w (lane rolls by +-C,
    # border lanes zeroed via broadcast f32 masks — no iota/mod/select).
    left = pltpu.roll(x, shift=C, axis=2) * lmask_ref[...]
    right = pltpu.roll(x, shift=WC - C, axis=2) * rmask_ref[...]
    sw = x + (left + right)

    # Separable pass 2: 3-tap zero-padded sum along h via shifted slices.
    if H > 1:
        zrow = jnp.zeros_like(sw[:, :1, :])
        up = jnp.concatenate([zrow, sw[:, : H - 1, :]], axis=1)    # row h-1
        down = jnp.concatenate([sw[:, 1:, :], zrow], axis=1)       # row h+1
        total = sw + (up + down)
    else:
        total = sw

    # Fixed divisor 9 == AvgPool3d((1,3,3), pad=(0,1,1), count_include_pad=True).
    o_ref[...] = (total * (1.0 / 9.0)).astype(o_ref.dtype)


def _pick_tile(n_slabs: int, slab_bytes: int, target_bytes: int = 2 << 20) -> int:
    """Slabs per grid step: ~2 MiB of input per block (amortizes the ~0.35 us
    per-step pipeline overhead), but keep >= 2 grid steps when there is enough
    work so both v7x TensorCores get a share.  T is the leading (non-tiled)
    block dim, so it carries no sublane-alignment constraint."""
    t = max(1, target_bytes // max(slab_bytes, 1))
    if n_slabs >= 2:
        t = min(t, pl.cdiv(n_slabs, 2))
    return max(1, min(t, n_slabs))


def smooth_hw(x):
    """x: (B, Z, H, W, C) -> zero-padded 3x3 mean over (H, W), same shape/dtype."""
    B, Z, H, W, C = x.shape
    N = B * Z
    WC = W * C
    xf = x.reshape(N, H, WC)                 # lane-dense: last dim = W*C

    # Border-validity masks for the w pass (tiny resident inputs).
    w_idx = jnp.arange(WC, dtype=jnp.int32) // C               # lane -> w
    lmask = (w_idx >= 1).astype(jnp.float32).reshape(1, 1, WC)
    rmask = (w_idx <= W - 2).astype(jnp.float32).reshape(1, 1, WC)

    T = _pick_tile(N, H * WC * x.dtype.itemsize)
    grid = (pl.cdiv(N, T),)                  # partial last block allowed

    out = pl.pallas_call(
        functools.partial(_smooth_kernel, H=H, W=W, C=C),
        out_shape=jax.ShapeDtypeStruct((N, H, WC), x.dtype),
        grid=grid,
        in_specs=[
            pl.BlockSpec((T, H, WC), lambda i: (i, 0, 0)),
            pl.BlockSpec((1, 1, WC), lambda i: (0, 0, 0)),
            pl.BlockSpec((1, 1, WC), lambda i: (0, 0, 0)),
        ],
        out_specs=pl.BlockSpec((T, H, WC), lambda i: (i, 0, 0)),
        compiler_params=pltpu.CompilerParams(
            dimension_semantics=("parallel",),
            vmem_limit_bytes=48 * 1024 * 1024),
    )(xf, lmask, rmask)
    return out.reshape(B, Z, H, W, C)


def smoothing_block(x_upper, x_surface):
    """Pallas equivalent of SmoothingBlock.forward with
    smoothing_func = AvgPool3d((1, 3, 3), stride=1, padding=(0, 1, 1)).

    x_upper:   (b, z, h, w, c)
    x_surface: (b, 1, h, w, c)
    Returns smoothed tensors with identical shapes / dtypes.
    """
    return smooth_hw(x_upper), smooth_hw(x_surface)


def _ref_smooth(x):
    """Pure-JAX reference: AvgPool3d((1,3,3), stride=1, pad=(0,1,1), incl. pad)."""
    B, Z, H, W, C = x.shape
    xp = jnp.pad(x.astype(jnp.float32),
                 ((0, 0), (0, 0), (1, 1), (1, 1), (0, 0)))
    acc = jnp.zeros_like(x, dtype=jnp.float32)
    for dh in range(3):
        for dw in range(3):
            acc = acc + xp[:, :, dh:dh + H, dw:dw + W, :]
    return (acc / 9.0).astype(x.dtype)


if __name__ == "__main__":
    key = jax.random.PRNGKey(0)
    k_up, k_sf = jax.random.split(key)

    B, Z, H, W, C = 2, 4, 16, 16, 4
    x_upper = jax.random.normal(k_up, (B, Z, H, W, C), dtype=jnp.float32)
    x_surface = jax.random.normal(k_sf, (B, 1, H, W, C), dtype=jnp.float32)

    out_upper, out_surface = smoothing_block(x_upper, x_surface)
    jax.block_until_ready((out_upper, out_surface))

    ref_upper = _ref_smooth(x_upper)
    ref_surface = _ref_smooth(x_surface)

    assert out_upper.shape == x_upper.shape and out_upper.dtype == x_upper.dtype
    assert out_surface.shape == x_surface.shape and out_surface.dtype == x_surface.dtype
    assert jnp.allclose(out_upper, ref_upper, atol=1e-5, rtol=1e-5)
    assert jnp.allclose(out_surface, ref_surface, atol=1e-5, rtol=1e-5)

    print("KERNEL_OK")
</pallas_src>

<mosaic_0001>
module attributes {stable_mosaic.version = 11 : i64} {
  func.func @_smooth_kernel(%arg0: i32, %arg1: memref<4x16x64xf32, #tpu.memory_space<vmem>>, %arg2: memref<1x1x64xf32, #tpu.memory_space<vmem>>, %arg3: memref<1x1x64xf32, #tpu.memory_space<vmem>>, %arg4: memref<4x16x64xf32, #tpu.memory_space<vmem>>) attributes {dimension_semantics = [#tpu.dimension_semantics<parallel>], iteration_bounds = array<i64: 2>, scalar_prefetch = 0 : i64, scratch_operands = 0 : i64, tpu.core_type = #tpu.core_type<tc>, window_params = [{transform_indices = @transform_0, window_bounds = array<i64: 4, 16, 64>}, {pipeline_mode = #tpu.pipeline_mode<synchronous>, transform_indices = @transform_1, window_bounds = array<i64: 1, 1, 64>}, {pipeline_mode = #tpu.pipeline_mode<synchronous>, transform_indices = @transform_2, window_bounds = array<i64: 1, 1, 64>}, {transform_indices = @transform_3, window_bounds = array<i64: 4, 16, 64>}]} {
    %c0 = arith.constant 0 : index
    %c0_0 = arith.constant 0 : index
    %c0_1 = arith.constant 0 : index
    %0 = vector.load %arg1[%c0, %c0_0, %c0_1] : memref<4x16x64xf32, #tpu.memory_space<vmem>>, vector<4x16x64xf32>
    %c4_i32 = arith.constant 4 : i32
    %1 = tpu.dynamic_rotate %0 by %c4_i32 dim 2 : vector<4x16x64xf32>, i32 -> vector<4x16x64xf32>
    %c0_2 = arith.constant 0 : index
    %c0_3 = arith.constant 0 : index
    %c0_4 = arith.constant 0 : index
    %2 = vector.load %arg2[%c0_2, %c0_3, %c0_4] : memref<1x1x64xf32, #tpu.memory_space<vmem>>, vector<1x1x64xf32>
    %3 = vector.broadcast %2 : vector<1x1x64xf32> to vector<4x16x64xf32>
    %4 = arith.mulf %1, %3 : vector<4x16x64xf32>
    %c60_i32 = arith.constant 60 : i32
    %5 = tpu.dynamic_rotate %0 by %c60_i32 dim 2 : vector<4x16x64xf32>, i32 -> vector<4x16x64xf32>
    %c0_5 = arith.constant 0 : index
    %c0_6 = arith.constant 0 : index
    %c0_7 = arith.constant 0 : index
    %6 = vector.load %arg3[%c0_5, %c0_6, %c0_7] : memref<1x1x64xf32, #tpu.memory_space<vmem>>, vector<1x1x64xf32>
    %7 = vector.broadcast %6 : vector<1x1x64xf32> to vector<4x16x64xf32>
    %8 = arith.mulf %5, %7 : vector<4x16x64xf32>
    %9 = arith.addf %4, %8 : vector<4x16x64xf32>
    %10 = arith.addf %0, %9 : vector<4x16x64xf32>
    %cst = arith.constant 0.000000e+00 : f32
    %11 = vector.broadcast %cst : f32 to vector<4x1x64xf32>
    %12 = vector.extract_strided_slice %10 {offsets = [0, 0, 0], sizes = [4, 15, 64], strides = [1, 1, 1]} : vector<4x16x64xf32> to vector<4x15x64xf32>
    %13 = tpu.concatenate %11, %12 in 1 : vector<4x1x64xf32>, vector<4x15x64xf32> -> vector<4x16x64xf32>
    %14 = vector.extract_strided_slice %10 {offsets = [0, 1, 0], sizes = [4, 15, 64], strides = [1, 1, 1]} : vector<4x16x64xf32> to vector<4x15x64xf32>
    %15 = tpu.concatenate %14, %11 in 1 : vector<4x15x64xf32>, vector<4x1x64xf32> -> vector<4x16x64xf32>
    %16 = arith.addf %13, %15 : vector<4x16x64xf32>
    %17 = arith.addf %10, %16 : vector<4x16x64xf32>
    %cst_8 = arith.constant 0.111111112 : f32
    %18 = vector.broadcast %cst_8 : f32 to vector<4x16x64xf32>
    %19 = arith.mulf %17, %18 : vector<4x16x64xf32>
    %c0_9 = arith.constant 0 : index
    %c0_10 = arith.constant 0 : index
    %c0_11 = arith.constant 0 : index
    %20 = vector.load %arg4[%c0_9, %c0_10, %c0_11] : memref<4x16x64xf32, #tpu.memory_space<vmem>>, vector<4x16x64xf32>
    tpu.vector_store %arg4[%c0_9, %c0_10, %c0_11], %19 {strides = array<i32>} : memref<4x16x64xf32, #tpu.memory_space<vmem>>, vector<4x16x64xf32>,
    return
  }
  func.func @transform_0(%arg0: i32) -> (i32, i32, i32) {
    %c0_i32 = arith.constant 0 : i32
    %c0_i32_0 = arith.constant 0 : i32
    %c0_i32_1 = arith.constant 0 : i32
    return %arg0, %c0_i32, %c0_i32_0 : i32, i32, i32
  }
  func.func @transform_1(%arg0: i32) -> (i32, i32, i32) {
    %c0_i32 = arith.constant 0 : i32
    %c0_i32_0 = arith.constant 0 : i32
    %c0_i32_1 = arith.constant 0 : i32
    %c0_i32_2 = arith.constant 0 : i32
    return %c0_i32, %c0_i32_0, %c0_i32_1 : i32, i32, i32
  }
  func.func @transform_2(%arg0: i32) -> (i32, i32, i32) {
    %c0_i32 = arith.constant 0 : i32
    %c0_i32_0 = arith.constant 0 : i32
    %c0_i32_1 = arith.constant 0 : i32
    %c0_i32_2 = arith.constant 0 : i32
    return %c0_i32, %c0_i32_0, %c0_i32_1 : i32, i32, i32
  }
  func.func @transform_3(%arg0: i32) -> (i32, i32, i32) {
    %c0_i32 = arith.constant 0 : i32
    %c0_i32_0 = arith.constant 0 : i32
    %c0_i32_1 = arith.constant 0 : i32
    return %arg0, %c0_i32, %c0_i32_0 : i32, i32, i32
  }
}

</mosaic_0001>

<bundles_post_ra>
// kernel: tpu_custom_call.1
= control target key start
LH: loop header
LB: loop body
LE: loop exit
PB: predicated region body
PF: predicated region fallthrough
CT: control target
= control target key end

     0   :  { %8 = vsyncpa [#allocation3], 0  ;;  %s1081_s0 = inlined_call_operand.hbm [shape: f32[8,16,64], index: 0, kind: input, shape index: {}]   ;;  %s1082_s1 = inlined_call_operand.hbm [shape: f32[1,1,64], index: 1, kind: input, shape index: {}]   ;;  %s1083_s2 = inlined_call_operand.vmem [shape: f32[1,1,64], index: 2, kind: input, shape index: {}]   ;;  %s1084_s3 = inlined_call_operand.hbm [shape: f32[8,16,64], index: 3, kind: output, shape index: {}]  }
   0x1   :  { %10 = vsyncpa [#allocation3 + $0x1], 0 }
   0x2   :  { %11 = vsyncpa [#allocation6], 0 }
   0x3   :  { %12 = vsyncpa [#allocation4], 0 }
   0x4   :  { %14 = vsyncpa [#allocation4 + $0x1], 0  ;;  %s817_s12 = smov 0   ;;  %s819_s13 = smov 0  }
   0x5   :  { %s821_s14 = smov 0   ;;  %s823_s15 = smov 0  }
   0x6 LB: > { %s838_s16 = sadd.s32 4294967295, %s785_s15   ;;  %s565_s17 = sadd.s32 4294967294, %s785_s15   ;;  %s785_s15 = sphi %s823_s15, %s1095_s15   ;;  %s781_s14 = sphi %s821_s14, %s1094_s14   ;;  %s777_s13 = sphi %s819_s13, %s1093_s13   ;;  %s773_s12 = sphi %s817_s12, %s1092_s12  }
   0x7   : > { %s842_s18 = sadd.s32 1, %s785_s15   ;;  %s27_s19 = sadd.s32 1, %s781_s14 }
   0x8   : > { %s24_s20 = ssub.s32 %s785_s15, %s842_s18  ;;  %p34_p0 = scmp.ne.s32.totalorder %s781_s14, %s777_s13 }
   0x9   : > { %p25_p1 = scmp.eq.s32.totalorder %s24_s20, 0  ;;  %p35_p2 = scmp.eq.s32.totalorder %s785_s15, 0 }
   0xa   : > { %p40_p3 = scmp.ne.s32.totalorder %s777_s13, %s773_s12  ;;  %p41_p4 = scmp.eq.s32.totalorder %s838_s16, 0 }
   0xb   : > { %s854_s21 = scalar_select %p25_p1, %s781_s14, %s27_s19  }
   0xc   : > { %p856_p5 = por %p35_p2, %p34_p0  ;;  %p862_p6 = por %p41_p4, %p40_p3 }
   0xd   : > { %p106_p7 = scmp.eq.s32.totalorder %s838_s16, 1  ;;  %p112_p8 = scmp.eq.s32.totalorder %s565_s17, 1 }
   0xe   : > { %p566_p9 = scmp.ge.s32.totalorder %s785_s15, 1  ;;  %p119_p10 = scmp.lt.s32.totalorder %s785_s15, 3 }
   0xf   : > { %p869_p11 = por %p106_p7, %p34_p0  ;;  %p873_p12 = por %p112_p8, %p40_p3 }
  0x10   : > { %p877_p13 = pnand %p566_p9, %p119_p10  ;;  %s131_s29 = sshll.u32 %s1082_s1, 4  ;;  %s132_s29 = int_to_ptr.hbm [resolvable:$true] %s131_s29 }
  0x11   : > { %s787_s30 = smov [#allocation5]   ;;  %p608_p3 = scmp.lt.s32.totalorder %s785_s15, 2 }
  0x12   : > { %p595_p1 = pneg %p877_p13  ;;  %s133_s4 = sshll.u32 %s787_s30, 4  ;;  %s134_s4 = int_to_ptr.vmem [resolvable:$true] %s133_s4 }
  0x13   : > { %s147_s5 = sand.u32 1, %s781_s14   ;;  %p893_p7 = pnand %p608_p3, %p856_p5 }
  0x14   : > { %p596_p2 = pnand %p595_p1, %p41_p4  ;;  %s569_s7 = sshll.u32 %s147_s5, 6 }
  0x15   : > { %s584_s8 = sshll.u32 %s785_s15, 6  ;;  %s151_s19 = scalar_lea.vmem [#allocation2], %s569_s7 }
  0x16   : > { %598 = dma.hbm_to_vmem [thread:$0]  (!%p596_p2), %s132_s29, 16, %s134_s4, [#allocation6]  }
  0x17   : > { %s157_s11 = scalar_lea.hbm %s1081_s0, %s584_s8  ;;  %s160_s20 = sshll.u32 %s151_s19, 4  ;;  %s161_s20 = int_to_ptr.vmem [resolvable:$true] %s160_s20 }
  0x18   : > { %s158_s17 = sshll.u32 %s157_s11, 4  ;;  %s148_s27 = scalar_lea.sflag [#allocation3], %s147_s5  ;;  %s159_s17 = int_to_ptr.hbm [resolvable:$true] %s158_s17 }
  0x19   : > { %s685_s28 = sshra.s32 %s159_s17, 4  ;;  %p689_p8 = pneg %p893_p7  ;;  %s686_s28 = int_to_ptr.hbm [resolvable:$true] %s685_s28 }
  0x1a   : > { %s687_s22 = scalar_lea.hbm %s686_s28, 64  ;;  %s692_s4 = scalar_lea.hbm %s1081_s0, 128 }
  0x1b   : > { %p688_p5 = scmp.ne.s32.totalorder %s686_s28, %s687_s22  ;;  %p693_p1 = scmp.lt.s32.totalorder %s686_s28, %s1081_s0 }
  0x1c   : > { %p694_p2 = scmp.lt.s32.totalorder %s692_s4, %s687_s22 }
  0x1d   : > { %p690_p9 = pnand %p689_p8, %p688_p5 }
  0x1e   : > { %p695_p3 = por %p694_p2, %p693_p1 }
  0x1f   : > { %p691_p10 = pneg %p690_p9 }
  0x21   : > { %p696_p0 = pnand %p695_p3, %p691_p10 }
  0x23   : > { %699 = shalt.err (!%p696_p0)
}
  0x24   : > { %s788_s5 = smov 128   ;;  %s789_s7 = smov 8  }
  0x25   : > { %602 = dma.hbm_to_vmem [thread:$0]  (!%p893_p7), %s159_s17, 1024, %s161_s20, %s148_s27, %s788_s5, %s788_s5, %s789_s7  }
  0x26   : > { %172 = sbr.rel (%p877_p13) target bundleno = 561 (0x231), region = 32  ;;  %s914_s10 = sand.u32 (!%p877_p13), 1, %s777_s13  }
  0x27   : > { %s574_s11 = sshll.u32 (!%p877_p13), %s914_s10, 6  ;;  %s175_s19 = scalar_lea.sflag (!%p877_p13), [#allocation3], %s914_s10 }
  0x28   : > { %s178_s28 = scalar_lea.vmem (!%p877_p13), [#allocation2], %s574_s11 }
  0x2b   : > { %760 = dma.done.wait (%p862_p6), %s175_s19, 1024  }
  0x2c   : > { %762 = vsyncadd (%p862_p6), %s175_s19, 4294966272 }
  0x2d   : > { %764 = dma.done.wait (%p41_p4), [#allocation6], 16  }
  0x2e   : > { %766 = vsyncadd (%p41_p4), [#allocation6], 4294967280  ;;  %v928_v0 = vld [vmem:[%s178_s28 + $0x10] sm:$0xff]  ;;  %v930_v1 = vld [vmem:[%s178_s28] sm:$0xff]  ;;  %s790_s26 = smov 64   ;;  %vm217_vm0 = vcmask 1048064  }
  0x2f   : > { %224 = vrot.lane.b32.xlu1 %v928_v0, %s790_s26  ;;  %218 = vrot.lane.b32.xlu0 %v930_v1, %s790_s26  ;;  %v936_v2 = vld [vmem:[%s178_s28 + $0x20] sm:$0xff]  ;;  %v940_v3 = vld [vmem:[%s178_s28 + $0x18] sm:$0xff]  ;;  %s791_s17 = smov 4   ;;  %s792_s20 = smov 60   ;;  %vm382_vm1 = vcmask 1040384   ;;  %vm407_vm2 = vcmask 1046528  }
  0x30   : > { %230 = vrot.lane.b32.xlu2 %v936_v2, %s790_s26  ;;  %v942_v4 = vld [vmem:[%s178_s28 + $0x8] sm:$0xff]  ;;  %v952_v6 = vld [vmem:[%s178_s28 + $0x30] sm:$0xff]  ;;  %v954_v7 = vld [vmem:[%s178_s28 + $0x38] sm:$0xff]  ;;  %s793_s27 = smov 56   ;;  %s794_s22 = smov 68   ;;  %vm456_vm3 = vcmask 523264  }
  0x31   : > { %v944_v5 = vld [vmem:[%s178_s28 + $0x28] sm:$0xff]  ;;  %v653_v19 = vld [vmem:[%s1083_s2] ss:$0 sm:$0xff]  ;;  %s1011_s29 = scalar_lea.vmem [#allocation7], %s574_s11  ;;  %s586_s30 = sshll.u32 %s838_s16, 6 }
  0x32   : > { %v654_v24 = vld [vmem:[#allocation5] ss:$0 sm:$0xff]  ;;  %s478_s8 = scalar_lea.hbm %s1084_s3, %s586_s30  ;;  %s479_s16 = sshll.u32 %s1011_s29, 4  ;;  %s480_s16 = int_to_ptr.vmem [resolvable:$true] %s479_s16 }
  0x33   : > { %s481_s5 = sshll.u32 %s478_s8, 4  ;;  %s466_s7 = scalar_lea.sflag [#allocation4], %s914_s10  ;;  %s482_s5 = int_to_ptr.hbm [resolvable:$true] %s481_s5 }
  0x34   : > { %s729_s11 = sshra.s32 %s482_s5, 4  ;;  %s735_s23 = scalar_lea.hbm %s1084_s3, 128  ;;  %s730_s11 = int_to_ptr.hbm [resolvable:$true] %s729_s11 }
  0x35   : > { %s731_s19 = scalar_lea.hbm %s730_s11, 64  ;;  %p736_p0 = scmp.lt.s32.totalorder %s730_s11, %s1084_s3 }
  0x36   : > { %p732_p4 = scmp.ne.s32.totalorder %s730_s11, %s731_s19  ;;  %p737_p7 = scmp.lt.s32.totalorder %s735_s23, %s731_s19 }
  0x37   : > { %227 = vrot.lane.b32.xlu1 %v940_v3, %s790_s26  ;;  %221 = vrot.lane.b32.xlu0 %v942_v4, %s790_s26 }
  0x38   : > { %233 = vrot.lane.b32.xlu2 %v944_v5, %s790_s26  ;;  %p733_p6 = pnand %p732_p4, %p869_p11  ;;  %p738_p5 = por %p737_p7, %p736_p0 }
  0x3a   : > { %p734_p13 = pneg %p733_p6 }
  0x3c   : > { %p739_p8 = pnand %p738_p5, %p734_p13 }
  0x3f   : > { %236 = vrot.lane.b32.xlu0 %v952_v6, %s790_s26  ;;  %239 = vrot.lane.b32.xlu1 %v954_v7, %s790_s26 }
  0x8a   : > { %v231_v8 = vpop.permute.xlu2 %230 }
  0x8b   : > { %v232_v22 = vsel %vm217_vm0, %v231_v8, %v936_v2 }
  0x92   : > { %v234_v13 = vpop.permute.xlu2 %233 }
  0x93   : > { %v235_v14 = vsel %vm217_vm0, %v234_v13, %v944_v5 }
  0xa1   : > { %v225_v9 = vpop.permute.xlu1 %224  ;;  %v219_v10 = vpop.permute.xlu0 %218 }
  0xa2   : > { %v226_v11 = vsel %vm217_vm0, %v225_v9, %v928_v0  ;;  %v220_v12 = vsel %vm217_vm0, %v219_v10, %v930_v1 }
  0xa3   : > { %246 = vrot.lane.b32.xlu1 %v226_v11, %s790_s26  ;;  %242 = vrot.lane.b32.xlu2 %v220_v12, %s790_s26 }
  0xa9   : > { %v228_v15 = vpop.permute.xlu1 %227  ;;  %v222_v16 = vpop.permute.xlu0 %221 }
  0xaa   : > { %v229_v17 = vsel %vm217_vm0, %v228_v15, %v940_v3  ;;  %v223_v18 = vsel %vm217_vm0, %v222_v16, %v942_v4 }
  0xab   : > { %252 = vrot.lane.b32.xlu1 %v235_v14, %s790_s26  ;;  %248 = vrot.lane.b32.xlu2 %v229_v17, %s790_s26 }
  0xac   : > { %244 = vrot.lane.b32.xlu0 %v223_v18, %s790_s26 }
  0xb1   : > { %v237_v20 = vpop.permute.xlu0 %236  ;;  %v240_v23 = vpop.permute.xlu1 %239 }
  0xb2   : > { %v238_v21 = vsel %vm217_vm0, %v237_v20, %v952_v6  ;;  %v241_v25 = vsel %vm217_vm0, %v240_v23, %v954_v7 }
  0xb3   : > { %283 = vrot.lane.b32.xlu1 %v653_v19, %s791_s17  ;;  %254 = vrot.lane.b32.xlu2 %v238_v21, %s790_s26 }
  0xb4   : > { %250 = vrot.lane.b32.xlu0 %v232_v22, %s790_s26 }
  0xbb   : > { %269 = vrot.lane.b32.xlu2 %v654_v24, %s792_s20 }
  0xbc   : > { %256 = vrot.lane.b32.xlu0 %v241_v25, %s790_s26 }
  0xfd   : > { %v243_v28 = vpop.permute.xlu2 %242 }
  0xfe   : > { %v258_v31 = vsel %vm217_vm0, %v243_v28, %v930_v1 }
 0x105   : > { %v249_v38 = vpop.permute.xlu2 %248 }
 0x106   : > { %v261_v40 = vsel %vm217_vm0, %v249_v38, %v940_v3 }
 0x10d   : > { %v255_v46 = vpop.permute.xlu2 %254 }
 0x10e   : > { %v264_v47 = vsel %vm217_vm0, %v255_v46, %v952_v6 }
 0x115   : > { %v247_v26 = vpop.permute.xlu1 %246  ;;  %v270_v51 = vpop.permute.xlu2 %269 }
 0x116   : > { %v260_v32 = vsel %vm217_vm0, %v247_v26, %v928_v0  ;;  %v272_v58 = vmul.f32 %v270_v51, %v258_v31  ;;  %v275_v8 = vmul.f32 %v270_v51, %v261_v40  ;;  %v278_v14 = vmul.f32 %v270_v51, %v264_v47 }
 0x117   : > { %v274_v52 = vmul.f32 %v270_v51, %v260_v32 }
 0x11d   : > { %v253_v27 = vpop.permute.xlu1 %252 }
 0x11e   : > { %v245_v29 = vpop.permute.xlu0 %244  ;;  %v263_v41 = vsel %vm217_vm0, %v253_v27, %v944_v5 }
 0x11f   : > { %v259_v30 = vsel %vm217_vm0, %v245_v29, %v942_v4  ;;  %v277_v55 = vmul.f32 %v270_v51, %v263_v41 }
 0x120   : > { %v273_v59 = vmul.f32 %v270_v51, %v259_v30 }
 0x125   : > { %v284_v33 = vpop.permute.xlu1 %283 }
 0x126   : > { %v286_v34 = vmul.f32 %v284_v33, %v258_v31  ;;  %v288_v35 = vmul.f32 %v284_v33, %v260_v32  ;;  %v287_v36 = vmul.f32 %v284_v33, %v259_v30  ;;  %v251_v37 = vpop.permute.xlu0 %250  ;;  %v289_v42 = vmul.f32 %v284_v33, %v261_v40 }
 0x127   : > { %v262_v39 = vsel %vm217_vm0, %v251_v37, %v936_v2  ;;  %v291_v43 = vmul.f32 %v284_v33, %v263_v41  ;;  %v292_v49 = vmul.f32 %v284_v33, %v264_v47 }
 0x128   : > { %302 = vrot.lane.b32.xlu0 %v286_v34, %s793_s27  ;;  %306 = vrot.lane.b32.xlu2 %v288_v35, %s793_s27  ;;  %v290_v44 = vmul.f32 %v284_v33, %v262_v39  ;;  %v276_v9 = vmul.f32 %v270_v51, %v262_v39 }
 0x129   : > { %304 = vrot.lane.b32.xlu1 %v287_v36, %s793_s27 }
 0x12e   : > { %v257_v45 = vpop.permute.xlu0 %256 }
 0x12f   : > { %v265_v48 = vsel %vm217_vm0, %v257_v45, %v954_v7 }
 0x130   : > { %308 = vrot.lane.b32.xlu0 %v289_v42, %s793_s27  ;;  %312 = vrot.lane.b32.xlu2 %v291_v43, %s793_s27  ;;  %v293_v50 = vmul.f32 %v284_v33, %v265_v48  ;;  %v279_v15 = vmul.f32 %v270_v51, %v265_v48 }
 0x131   : > { %310 = vrot.lane.b32.xlu1 %v290_v44, %s793_s27 }
 0x138   : > { %314 = vrot.lane.b32.xlu0 %v292_v49, %s793_s27 }
 0x139   : > { %316 = vrot.lane.b32.xlu1 %v293_v50, %s793_s27 }
 0x182   : > { %v307_v53 = vpop.permute.xlu2 %306 }
 0x183   : > { %v328_v54 = vadd.f32 %v307_v53, %v274_v52 }
 0x185   : > { %346 = vrot.lane.b32.xlu1 %v328_v54, %s794_s22 }
 0x18a   : > { %v313_v56 = vpop.permute.xlu2 %312 }
 0x18b   : > { %v331_v57 = vadd.f32 %v313_v56, %v277_v55 }
 0x18d   : > { %352 = vrot.lane.b32.xlu1 %v331_v57, %s794_s22 }
 0x19a   : > { %v303_v60 = vpop.permute.xlu0 %302 }
 0x19b   : > { %v305_v61 = vpop.permute.xlu1 %304  ;;  %v326_v62 = vadd.f32 %v303_v60, %v272_v58 }
 0x19c   : > { %v327_v63 = vadd.f32 %v305_v61, %v273_v59 }
 0x19d   : > { %342 = vrot.lane.b32.xlu2 %v326_v62, %s794_s22 }
 0x19e   : > { %344 = vrot.lane.b32.xlu0 %v327_v63, %s794_s22 }
 0x1a2   : > { %v309_v10 = vpop.permute.xlu0 %308 }
 0x1a3   : > { %v311_v11 = vpop.permute.xlu1 %310  ;;  %v329_v12 = vadd.f32 %v309_v10, %v275_v8 }
 0x1a4   : > { %v330_v13 = vadd.f32 %v311_v11, %v276_v9 }
 0x1a5   : > { %348 = vrot.lane.b32.xlu2 %v329_v12, %s794_s22 }
 0x1a6   : > { %350 = vrot.lane.b32.xlu0 %v330_v13, %s794_s22 }
 0x1aa   : > { %v315_v16 = vpop.permute.xlu0 %314 }
 0x1ab   : > { %v317_v17 = vpop.permute.xlu1 %316  ;;  %v332_v18 = vadd.f32 %v315_v16, %v278_v14 }
 0x1ac   : > { %v333_v19 = vadd.f32 %v317_v17, %v279_v15 }
 0x1ad   : > { %354 = vrot.lane.b32.xlu2 %v332_v18, %s794_s22 }
 0x1ae   : > { %356 = vrot.lane.b32.xlu0 %v333_v19, %s794_s22 }
 0x1f7   : > { %v343_v20 = vpop.permute.xlu2 %342  ;;  %v347_v21 = vpop.permute.xlu1 %346 }
 0x1f8   : > { %v368_v22 = vadd.f32 %v347_v21, %v928_v0  ;;  %v366_v37 = vadd.f32 %v343_v20, %v930_v1 }
 0x1fa   : > { %v386_v24 = vrot.slane %v368_v22, 7  ;;  %v411_v26 = vrot.slane %v368_v22, 1  ;;  %v383_v39 = vrot.slane %v366_v37, 7  ;;  %v408_v42 = vrot.slane %v366_v37, 1 }
 0x1fc   : > { %v404_v29 = vsel %vm382_vm1, 0.0, %v386_v24  ;;  %v403_v46 = vsel %vm382_vm1, 0.0, %v383_v39 }
 0x1ff   : > { %v349_v23 = vpop.permute.xlu2 %348  ;;  %v353_v40 = vpop.permute.xlu1 %352 }
 0x200   : > { %v369_v25 = vadd.f32 %v349_v23, %v940_v3  ;;  %v371_v45 = vadd.f32 %v353_v40, %v944_v5 }
 0x202   : > { %v387_v27 = vrot.slane %v369_v25, 7  ;;  %v412_v28 = vrot.slane %v369_v25, 1  ;;  %v415_v51 = vrot.slane %v371_v45, 1  ;;  %v390_v57 = vrot.slane %v371_v45, 7 }
 0x204   : > { %v388_v30 = vsel %vm382_vm1, %v386_v24, %v387_v27  ;;  %v413_v31 = vsel %vm407_vm2, %v411_v26, %v412_v28  ;;  %v429_v32 = vsel %vm407_vm2, %v412_v28, 0.0  ;;  %v430_v60 = vsel %vm407_vm2, %v415_v51, 0.0 }
 0x205   : > { %v434_v33 = vadd.f32 %v413_v31, %v404_v29  ;;  %v435_v0 = vadd.f32 %v429_v32, %v388_v30 }
 0x207   : > { %v442_v34 = vadd.f32 %v434_v33, %v368_v22  ;;  %v443_v35 = vadd.f32 %v435_v0, %v369_v25  ;;  %v355_v55 = vpop.permute.xlu2 %354 }
 0x208   : > { %v372_v61 = vadd.f32 %v355_v55, %v952_v6 }
 0x209   : > { %v450_v3 = vmul.f32 0.11111111, %v442_v34  ;;  %v451_v36 = vmul.f32 0.11111111, %v443_v35 }
 0x20a   : > { %v392_v13 = vrot.slane %v372_v61, 7  ;;  %v417_v16 = vrot.slane %v372_v61, 1 }
 0x20b   : > { %459 = vst.msk [vmem:[%s1011_s29 + $0x10] sm:$0xff] %vm456_vm3, %v450_v3 }
 0x20c   : > { %460 = vst.msk [vmem:[%s1011_s29 + $0x18] sm:$0xff] %vm456_vm3, %v451_v36  ;;  %v406_v19 = vsel %vm382_vm1, 0.0, %v392_v13 }
 0x210   : > { %v345_v38 = vpop.permute.xlu0 %344 }
 0x211   : > { %v367_v41 = vadd.f32 %v345_v38, %v942_v4 }
 0x213   : > { %v384_v43 = vrot.slane %v367_v41, 7  ;;  %v409_v44 = vrot.slane %v367_v41, 1 }
 0x215   : > { %v385_v47 = vsel %vm382_vm1, %v383_v39, %v384_v43  ;;  %v410_v48 = vsel %vm407_vm2, %v408_v42, %v409_v44  ;;  %v428_v49 = vsel %vm407_vm2, %v409_v44, 0.0 }
 0x216   : > { %v432_v1 = vadd.f32 %v410_v48, %v403_v46  ;;  %v433_v50 = vadd.f32 %v428_v49, %v385_v47 }
 0x218   : > { %v440_v52 = vadd.f32 %v432_v1, %v366_v37  ;;  %v441_v4 = vadd.f32 %v433_v50, %v367_v41  ;;  %v351_v53 = vpop.permute.xlu0 %350 }
 0x219   : > { %v370_v54 = vadd.f32 %v351_v53, %v936_v2 }
 0x21a   : > { %v448_v5 = vmul.f32 0.11111111, %v440_v52  ;;  %v449_v56 = vmul.f32 0.11111111, %v441_v4 }
 0x21b   : > { %v389_v58 = vrot.slane %v370_v54, 7  ;;  %v414_v59 = vrot.slane %v370_v54, 1 }
 0x21c   : > { %457 = vst.msk [vmem:[%s1011_s29] sm:$0xff] %vm456_vm3, %v448_v5 }
 0x21d   : > { %458 = vst.msk [vmem:[%s1011_s29 + $0x8] sm:$0xff] %vm456_vm3, %v449_v56  ;;  %v391_v62 = vsel %vm382_vm1, %v389_v58, %v390_v57  ;;  %v405_v2 = vsel %vm382_vm1, 0.0, %v389_v58  ;;  %v416_v63 = vsel %vm407_vm2, %v414_v59, %v415_v51 }
 0x21e   : > { %v436_v8 = vadd.f32 %v416_v63, %v405_v2  ;;  %v437_v9 = vadd.f32 %v430_v60, %v391_v62 }
 0x220   : > { %v444_v10 = vadd.f32 %v436_v8, %v370_v54  ;;  %v445_v11 = vadd.f32 %v437_v9, %v371_v45  ;;  %v357_v12 = vpop.permute.xlu0 %356 }
 0x221   : > { %v373_v14 = vadd.f32 %v357_v12, %v954_v7 }
 0x222   : > { %v452_v6 = vmul.f32 0.11111111, %v444_v10  ;;  %v453_v15 = vmul.f32 0.11111111, %v445_v11 }
 0x223   : > { %v393_v17 = vrot.slane %v373_v14, 7  ;;  %v418_v18 = vrot.slane %v373_v14, 1 }
 0x224   : > { %461 = vst.msk [vmem:[%s1011_s29 + $0x20] sm:$0xff] %vm456_vm3, %v452_v6 }
 0x225   : > { %462 = vst.msk [vmem:[%s1011_s29 + $0x28] sm:$0xff] %vm456_vm3, %v453_v15  ;;  %v394_v7 = vsel %vm382_vm1, %v392_v13, %v393_v17  ;;  %v419_v20 = vsel %vm407_vm2, %v417_v16, %v418_v18  ;;  %v431_v21 = vsel %vm407_vm2, %v418_v18, 0.0 }
 0x226   : > { %v438_v22 = vadd.f32 %v419_v20, %v406_v19  ;;  %v439_v23 = vadd.f32 %v431_v21, %v394_v7 }
 0x228   : > { %v446_v24 = vadd.f32 %v438_v22, %v372_v61  ;;  %v447_v25 = vadd.f32 %v439_v23, %v373_v14 }
 0x22a   : > { %v454_v26 = vmul.f32 0.11111111, %v446_v24  ;;  %v455_v27 = vmul.f32 0.11111111, %v447_v25 }
 0x22c   : > { %463 = vst.msk [vmem:[%s1011_s29 + $0x30] sm:$0xff] %vm456_vm3, %v454_v26 }
 0x22d   : > { %464 = vst.msk [vmem:[%s1011_s29 + $0x38] sm:$0xff] %vm456_vm3, %v455_v27 }
 0x22e   : > { %742 = shalt.err (!%p739_p8)
}
 0x22f   : > { %s795_s10 = smov 128   ;;  %s796_s20 = smov 8  }
 0x230   : > { %593 = dma.vmem_to_hbm [thread:$0]  (%p869_p11), %s480_s16, 1024, %s482_s5, %s466_s7, %s795_s10, %s795_s10, %s796_s20  }
 0x231 PF: > { %s496_s27 = sand.u32 1, %s773_s12   ;;  %p1091_p9 = scmp.ge.s32.totalorder %s785_s15, 2 }
 0x232   : > { %s497_s22 = scalar_lea.sflag [#allocation4], %s496_s27 }
 0x233   : > { %p604_p10 = pnand %p1091_p9, %p873_p12 }
 0x235   : > { %p605_p1 = pneg %p604_p10 }
 0x237   : > { %768 = dma.done.wait (%p605_p1), %s497_s22, 1024  }
 0x238   : > { %770 = vsyncadd (%p605_p1), %s497_s22, 4294966272  ;;  %p17_p2 = scmp.ge.s32.totalorder %s842_s18, 4   ;;  %s1092_s12 = smov %s777_s13 }
 0x239   : > { %s1093_s13 = smov %s781_s14  ;;  %s1094_s14 = smov %s854_s21 }
 0x23a   : > { %s1095_s15 = smov %s842_s18  ;;  %19 = sbr.rel (!%p17_p2) target bundleno = 6 (0x6), region = 81 }
 0x23f   :  { %503 = vsyncpa [#allocation3], 1 }
 0x240   :  { %505 = vsyncpa [#allocation3 + $0x1], 1 }
 0x241   :  { %506 = vsyncpa [#allocation6], 1 }
 0x242   :  { %507 = vsyncpa [#allocation4], 1 }
 0x243   :  { %509 = vsyncpa [#allocation4 + $0x1], 1 }

</bundles_post_ra>
